<compile_context>
chip_gen: v7x
topology: tpu7x:2x2x1
jax: 0.10.0
libtpu: 0.0.40
codegen_flags: <defaults>
</compile_context>

<pallas_src>
import jax
import jax.numpy as jnp
from jax import lax
from jax.experimental import pallas as pl
from jax.experimental.pallas import tpu as pltpu

INPUT_SIZE = 32   # input_size for Linear(input_size, 64)
H1 = 64
H2 = 32
OUT = 1

DEFAULT_TB = 8192      # batch rows per grid step (multiple of DEFAULT_CHUNK)
DEFAULT_CHUNK = 1024   # rows per in-kernel sub-chunk (multiple of 128)


def _make_kernel(chunk_rows, num_chunks):
    """Builds the fused 3-layer MLP kernel for one batch tile.

    Kernel refs:
      x_ref:  [TB, IN]          f32  (streamed per grid step)
      w1_ref: [IN, 64]  bf16    b1_ref: [1, 64] f32
      w2_ref: [64, 32]  bf16    b2_ref: [1, 32] f32
      w3_ref: [1, 32]   f32     b3_ref: [1, 1]  f32
      o_ref:  [TB//CS, CS]      f32  (lane-dense output slab)
    """

    def kernel(x_ref, w1_ref, b1_ref, w2_ref, b2_ref, w3_ref, b3_ref, o_ref):
        w1 = w1_ref[...]
        b1 = b1_ref[...]
        w2 = w2_ref[...]
        b2 = b2_ref[...]
        w3 = w3_ref[...]
        b3 = b3_ref[...]

        def chunk_body(c, carry):
            off = pl.multiple_of(c * chunk_rows, chunk_rows)
            # Cast the streamed operand to bf16 in-kernel; accumulate in f32.
            xc = x_ref[pl.ds(off, chunk_rows), :].astype(jnp.bfloat16)

            # Layer 1: Linear + ReLU  (Dropout(0.1) is identity in eval mode).
            h1 = jnp.dot(xc, w1, preferred_element_type=jnp.float32)
            h1 = jnp.maximum(h1 + b1, 0.0)                      # [CS, 64] f32

            # Layer 2: Linear + ReLU  (bf16 MXU feed, f32 accumulation).
            h2 = jnp.dot(h1.astype(jnp.bfloat16), w2,
                         preferred_element_type=jnp.float32)
            h2 = jnp.maximum(h2 + b2, 0.0)                      # [CS, 32] f32

            # Layer 3 (N=1): contract on the feature dim with the batch rows as
            # the output lane dim -> a lane-dense (1, CS) row.  MXU has plenty
            # of slack here; this avoids a sublane->lane relayout and masked
            # single-lane stores.
            row = lax.dot_general(w3, h2, (((1,), (1,)), ((), ())),
                                  preferred_element_type=jnp.float32)
            o_ref[pl.ds(c, 1), :] = row + b3                    # dense vst
            return carry

        lax.fori_loop(0, num_chunks, chunk_body, 0)

    return kernel


def regression_model_forward(x, params, tb=DEFAULT_TB, chunk=DEFAULT_CHUNK):
    """x: [B, INPUT_SIZE] float32. Returns [B, 1] float32."""
    w1, b1, w2, b2, w3, b3 = params
    B, in_dim = x.shape

    # Tile / chunk selection (all Python ints):
    #  - small batches: one tile covering the whole batch (block == full dims,
    #    so no (8,128) divisibility constraints and no padding needed);
    #  - large batches: CS-row chunks, tile = multiple of CS that is <= B so
    #    only the *last* grid block is partial.
    if B <= chunk:
        cs = B
        tb = B
    else:
        cs = chunk
        tb = min(tb, (B // cs) * cs)
    num_chunks = tb // cs
    grid_b = pl.cdiv(B, tb)

    # Weights are tiny; pre-cast them to bf16 (negligible HBM cost) so they sit
    # bf16-resident in VMEM across all grid steps.
    w1_bf = w1.astype(jnp.bfloat16)
    w2_bf = w2.astype(jnp.bfloat16)

    resident = lambda a: pl.BlockSpec(a.shape, lambda i: (0, 0))

    cost = pl.CostEstimate(
        flops=2 * grid_b * tb * (in_dim * H1 + H1 * H2 + H2 * OUT),
        transcendentals=0,
        bytes_accessed=(B * in_dim * 4 + grid_b * tb * 4
                        + in_dim * H1 * 2 + H1 * H2 * 2
                        + (H1 + H2 + H2 + OUT) * 4),
    )

    out = pl.pallas_call(
        _make_kernel(cs, num_chunks),
        out_shape=jax.ShapeDtypeStruct((grid_b, num_chunks, cs), jnp.float32),
        grid=(grid_b,),
        in_specs=[
            pl.BlockSpec((tb, in_dim), lambda i: (i, 0)),   # x: tiled over batch (f32)
            resident(w1_bf), resident(b1),                  # weights/biases stay
            resident(w2_bf), resident(b2),                  # VMEM-resident
            resident(w3), resident(b3),
        ],
        out_specs=pl.BlockSpec((None, num_chunks, cs), lambda i: (i, 0, 0)),
        compiler_params=pltpu.CompilerParams(
            dimension_semantics=("parallel",),
            vmem_limit_bytes=48 * 1024 * 1024,
        ),
        cost_estimate=cost,
    )(x, w1_bf, b1, w2_bf, b2, w3, b3)

    # Lane-dense slab -> (B, 1); garbage rows from the partial last block (if
    # any) are sliced off here.
    return out.reshape(-1)[:B].reshape(B, OUT)


def init_params(key, input_size=INPUT_SIZE):
    """Deterministic synthetic parameters with PyTorch-Linear-like init.
    Weights stored transposed ([in_features, out_features]); w3 stored as a
    [1, H2] row vector for the transposed-RHS final dot."""
    k1, k2, k3, k4, k5, k6 = jax.random.split(key, 6)

    def uinit(k, fan_in, shape):
        bound = 1.0 / jnp.sqrt(fan_in)
        return jax.random.uniform(k, shape, jnp.float32, -bound, bound)

    w1 = uinit(k1, input_size, (input_size, H1))
    b1 = uinit(k2, input_size, (1, H1))
    w2 = uinit(k3, H1, (H1, H2))
    b2 = uinit(k4, H1, (1, H2))
    w3 = uinit(k5, H2, (1, H2))        # row vector
    b3 = uinit(k6, H2, (1, OUT))
    return (w1, b1, w2, b2, w3, b3)


def _reference(x, params):
    """Pure-JAX reference mirroring the kernel's bf16 casts (f32 accumulation)."""
    w1, b1, w2, b2, w3, b3 = params
    xb = x.astype(jnp.bfloat16).astype(jnp.float32)
    w1b = w1.astype(jnp.bfloat16).astype(jnp.float32)
    w2b = w2.astype(jnp.bfloat16).astype(jnp.float32)

    h1 = jnp.maximum(xb @ w1b + b1, 0.0)
    h1 = h1.astype(jnp.bfloat16).astype(jnp.float32)
    h2 = jnp.maximum(h1 @ w2b + b2, 0.0)
    return h2 @ w3.T + b3


if __name__ == "__main__":
    key = jax.random.PRNGKey(0)
    kx, kp, kx2 = jax.random.split(key, 3)

    params = init_params(kp, INPUT_SIZE)

    # Primary small check (single tile, single chunk).
    B = 8
    x = jax.random.normal(kx, (B, INPUT_SIZE), jnp.float32)
    out = jax.block_until_ready(regression_model_forward(x, params))
    ref = _reference(x, params)
    assert out.shape == (B, OUT), out.shape
    assert jnp.allclose(out, ref, atol=2e-2, rtol=2e-2), (out, ref)

    # Exercise the tiled path: 2 grid steps, 2 chunks/tile, partial last block.
    B2 = 300
    x2 = jax.random.normal(kx2, (B2, INPUT_SIZE), jnp.float32)
    out2 = jax.block_until_ready(
        regression_model_forward(x2, params, tb=256, chunk=128))
    ref2 = _reference(x2, params)
    assert out2.shape == (B2, OUT), out2.shape
    assert jnp.allclose(out2, ref2, atol=2e-2, rtol=2e-2)

    print("KERNEL_OK")
</pallas_src>

<mosaic_0001>
module attributes {stable_mosaic.version = 11 : i64} {
  func.func @kernel(%arg0: i32, %arg1: memref<8x32xf32, #tpu.memory_space<vmem>>, %arg2: memref<32x64xbf16, #tpu.memory_space<vmem>>, %arg3: memref<1x64xf32, #tpu.memory_space<vmem>>, %arg4: memref<64x32xbf16, #tpu.memory_space<vmem>>, %arg5: memref<1x32xf32, #tpu.memory_space<vmem>>, %arg6: memref<1x32xf32, #tpu.memory_space<vmem>>, %arg7: memref<1x1xf32, #tpu.memory_space<vmem>>, %arg8: memref<1x1x8xf32, #tpu.memory_space<vmem>>) attributes {dimension_semantics = [#tpu.dimension_semantics<parallel>], iteration_bounds = array<i64: 1>, scalar_prefetch = 0 : i64, scratch_operands = 0 : i64, tpu.core_type = #tpu.core_type<tc>, window_params = [{transform_indices = @transform_0, window_bounds = array<i64: 8, 32>}, {pipeline_mode = #tpu.pipeline_mode<synchronous>, transform_indices = @transform_1, window_bounds = array<i64: 32, 64>}, {pipeline_mode = #tpu.pipeline_mode<synchronous>, transform_indices = @transform_2, window_bounds = array<i64: 1, 64>}, {pipeline_mode = #tpu.pipeline_mode<synchronous>, transform_indices = @transform_3, window_bounds = array<i64: 64, 32>}, {pipeline_mode = #tpu.pipeline_mode<synchronous>, transform_indices = @transform_4, window_bounds = array<i64: 1, 32>}, {pipeline_mode = #tpu.pipeline_mode<synchronous>, transform_indices = @transform_5, window_bounds = array<i64: 1, 32>}, {pipeline_mode = #tpu.pipeline_mode<synchronous>, transform_indices = @transform_6, window_bounds = array<i64: 1, 1>}, {transform_indices = @transform_7, window_bounds = array<i64: 1, 1, 8>}]} {
    %c0 = arith.constant 0 : index
    %c0_0 = arith.constant 0 : index
    %0 = vector.load %arg2[%c0, %c0_0] : memref<32x64xbf16, #tpu.memory_space<vmem>>, vector<32x64xbf16>
    %c0_1 = arith.constant 0 : index
    %c0_2 = arith.constant 0 : index
    %1 = vector.load %arg3[%c0_1, %c0_2] : memref<1x64xf32, #tpu.memory_space<vmem>>, vector<1x64xf32>
    %c0_3 = arith.constant 0 : index
    %c0_4 = arith.constant 0 : index
    %2 = vector.load %arg4[%c0_3, %c0_4] : memref<64x32xbf16, #tpu.memory_space<vmem>>, vector<64x32xbf16>
    %c0_5 = arith.constant 0 : index
    %c0_6 = arith.constant 0 : index
    %3 = vector.load %arg5[%c0_5, %c0_6] : memref<1x32xf32, #tpu.memory_space<vmem>>, vector<1x32xf32>
    %c0_7 = arith.constant 0 : index
    %c0_8 = arith.constant 0 : index
    %4 = vector.load %arg6[%c0_7, %c0_8] : memref<1x32xf32, #tpu.memory_space<vmem>>, vector<1x32xf32>
    %c0_9 = arith.constant 0 : index
    %c0_10 = arith.constant 0 : index
    %5 = vector.load %arg7[%c0_9, %c0_10] : memref<1x1xf32, #tpu.memory_space<vmem>>, vector<1x1xf32>
    %c0_i32 = arith.constant 0 : i32
    %c8_i32 = arith.constant 8 : i32
    %6 = arith.muli %c0_i32, %c8_i32 : i32
    %7 = tpu.assume_multiple %6, 8 : i32
    %8 = arith.index_cast %7 : i32 to index
    %c0_11 = arith.constant 0 : index
    %9 = vector.load %arg1[%8, %c0_11] : memref<8x32xf32, #tpu.memory_space<vmem>>, vector<8x32xf32>
    %10 = arith.truncf %9 : vector<8x32xf32> to vector<8x32xbf16>
    %cst = arith.constant dense<0.000000e+00> : vector<8x64xf32>
    %11 = tpu.matmul %10, %0, %cst {dimension_numbers = #tpu.dot_dimension_numbers<[1], [0], [0], [1], [0, 0, 1, 1], [], []>} : vector<8x32xbf16>, vector<32x64xbf16>, vector<8x64xf32> -> vector<8x64xf32>
    %12 = vector.broadcast %1 : vector<1x64xf32> to vector<8x64xf32>
    %13 = arith.addf %11, %12 : vector<8x64xf32>
    %cst_12 = arith.constant 0.000000e+00 : f32
    %14 = vector.broadcast %cst_12 : f32 to vector<8x64xf32>
    %15 = arith.maximumf %13, %14 : vector<8x64xf32>
    %16 = arith.truncf %15 : vector<8x64xf32> to vector<8x64xbf16>
    %cst_13 = arith.constant dense<0.000000e+00> : vector<8x32xf32>
    %17 = tpu.matmul %16, %2, %cst_13 {dimension_numbers = #tpu.dot_dimension_numbers<[1], [0], [0], [1], [0, 0, 1, 1], [], []>} : vector<8x64xbf16>, vector<64x32xbf16>, vector<8x32xf32> -> vector<8x32xf32>
    %18 = vector.broadcast %3 : vector<1x32xf32> to vector<8x32xf32>
    %19 = arith.addf %17, %18 : vector<8x32xf32>
    %cst_14 = arith.constant 0.000000e+00 : f32
    %20 = vector.broadcast %cst_14 : f32 to vector<8x32xf32>
    %21 = arith.maximumf %19, %20 : vector<8x32xf32>
    %cst_15 = arith.constant dense<0.000000e+00> : vector<1x8xf32>
    %22 = tpu.matmul %4, %21, %cst_15 {dimension_numbers = #tpu.dot_dimension_numbers<[1], [1], [0], [0], [0, 0, 1, 0], [], []>} : vector<1x32xf32>, vector<8x32xf32>, vector<1x8xf32> -> vector<1x8xf32>
    %23 = vector.broadcast %5 : vector<1x1xf32> to vector<1x8xf32>
    %24 = arith.addf %22, %23 : vector<1x8xf32>
    %c0_16 = arith.constant 0 : index
    %25 = arith.index_cast %c0_i32 : i32 to index
    %c0_17 = arith.constant 0 : index
    %26 = vector.load %arg8[%c0_16, %25, %c0_17] : memref<1x1x8xf32, #tpu.memory_space<vmem>>, vector<1x1x8xf32>
    %27 = vector.shape_cast %26 : vector<1x1x8xf32> to vector<1x8xf32>
    %28 = vector.shape_cast %24 : vector<1x8xf32> to vector<1x1x8xf32>
    tpu.vector_store %arg8[%c0_16, %25, %c0_17], %28 {strides = array<i32>} : memref<1x1x8xf32, #tpu.memory_space<vmem>>, vector<1x1x8xf32>,
    %c1_i32 = arith.constant 1 : i32
    return
  }
  func.func @transform_0(%arg0: i32) -> (i32, i32) {
    %c0_i32 = arith.constant 0 : i32
    %c0_i32_0 = arith.constant 0 : i32
    return %arg0, %c0_i32 : i32, i32
  }
  func.func @transform_1(%arg0: i32) -> (i32, i32) {
    %c0_i32 = arith.constant 0 : i32
    %c0_i32_0 = arith.constant 0 : i32
    %c0_i32_1 = arith.constant 0 : i32
    return %c0_i32, %c0_i32_0 : i32, i32
  }
  func.func @transform_2(%arg0: i32) -> (i32, i32) {
    %c0_i32 = arith.constant 0 : i32
    %c0_i32_0 = arith.constant 0 : i32
    %c0_i32_1 = arith.constant 0 : i32
    return %c0_i32, %c0_i32_0 : i32, i32
  }
  func.func @transform_3(%arg0: i32) -> (i32, i32) {
    %c0_i32 = arith.constant 0 : i32
    %c0_i32_0 = arith.constant 0 : i32
    %c0_i32_1 = arith.constant 0 : i32
    return %c0_i32, %c0_i32_0 : i32, i32
  }
  func.func @transform_4(%arg0: i32) -> (i32, i32) {
    %c0_i32 = arith.constant 0 : i32
    %c0_i32_0 = arith.constant 0 : i32
    %c0_i32_1 = arith.constant 0 : i32
    return %c0_i32, %c0_i32_0 : i32, i32
  }
  func.func @transform_5(%arg0: i32) -> (i32, i32) {
    %c0_i32 = arith.constant 0 : i32
    %c0_i32_0 = arith.constant 0 : i32
    %c0_i32_1 = arith.constant 0 : i32
    return %c0_i32, %c0_i32_0 : i32, i32
  }
  func.func @transform_6(%arg0: i32) -> (i32, i32) {
    %c0_i32 = arith.constant 0 : i32
    %c0_i32_0 = arith.constant 0 : i32
    %c0_i32_1 = arith.constant 0 : i32
    return %c0_i32, %c0_i32_0 : i32, i32
  }
  func.func @transform_7(%arg0: i32) -> (i32, i32, i32) {
    %c0_i32 = arith.constant 0 : i32
    %c0_i32_0 = arith.constant 0 : i32
    %c0_i32_1 = arith.constant 0 : i32
    return %arg0, %c0_i32, %c0_i32_0 : i32, i32, i32
  }
}

</mosaic_0001>

<bundles_post_ra>
// kernel: tpu_custom_call.1
= control target key start
LH: loop header
LB: loop body
LE: loop exit
PB: predicated region body
PF: predicated region fallthrough
CT: control target
= control target key end

     0   :  { %s465_s0 = inlined_call_operand.vmem [shape: f32[8,32], index: 0, kind: input, shape index: {}]   ;;  %s466_s1 = inlined_call_operand.vmem [shape: bf16[32,64], index: 1, kind: input, shape index: {}]   ;;  %s467_s2 = inlined_call_operand.vmem [shape: f32[1,64], index: 2, kind: input, shape index: {}]   ;;  %s468_s3 = inlined_call_operand.vmem [shape: bf16[64,32], index: 3, kind: input, shape index: {}]   ;;  %s469_s4 = inlined_call_operand.vmem [shape: f32[1,32], index: 4, kind: input, shape index: {}]   ;;  %s470_s5 = inlined_call_operand.vmem [shape: f32[1,32], index: 5, kind: input, shape index: {}]   ;;  %s471_s6 = inlined_call_operand.<no memory space> [shape: f32[1,1], index: 6, kind: input, shape index: {}]   ;;  %s472_s7 = inlined_call_operand.hbm [shape: f32[1,1,8], index: 7, kind: output, shape index: {}]  }
   0x1   :  { %v12_v0 = vstv %s471_s6 }
   0x2   :  { %13 = vst [vmem:[#allocation2] sm:$0x1] %v12_v0 }
   0x3   :  { %v340_v1 = vld [vmem:[%s466_s1] sm:$0xff]   ;;  %v370_v2 = vmov 0.0   ;;  %v341_v3 = vld [vmem:[%s466_s1 + $0x8] sm:$0xff]   ;;  %vm371_vm0 = vmmov 0   ;;  %vm66_vm1 = vcmask 261120  }
   0x4   :  { %310 = vmatprep.subr.bf16.mxu0 %v370_v2  ;;  %318 = vmatprep.subr.bf16.mxu1 %v370_v2  ;;  %v46_v4 = vld [vmem:[%s465_s0] sm:$0xff]  ;;  %v343_v6 = vld [vmem:[%s468_s3 + $0x8] sm:$0xff]  }
   0x5   :  { %311 = vmatpush3.bf16.msra.mxu0 %v340_v1  ;;  %314 = vmatprep.mubr.msk.bf16.mxu0 %vm371_vm0, %v370_v2  ;;  %v342_v5 = vld [vmem:[%s468_s3] sm:$0xff]   ;;  %v47_v7 = vpack.c.bf16 %v46_v4, %v46_v4 }
   0x6   :  { %312 = vmatprep.subr.bf16.mxu0 %v370_v2  ;;  %326 = vmatprep.mubr.msk.bf16.mxu1 %vm371_vm0, %v370_v2 }
   0x7   :  { %319 = vmatpush3.bf16.msra.mxu1 %v342_v5 }
   0x8   :  { %320 = vmatprep.subr.bf16.mxu1 %v370_v2 }
   0x9   :  { %313 = vmatpush3.bf16.msra.mxu0 %v341_v3 }
   0xa   :  { %14 = vsyncpa [#allocation4], 0  ;;  %330 = vmatprep.subr.mxu0 %v370_v2  ;;  %v344_v8 = vld [vmem:[%s468_s3 + $0x10] sm:$0xff]   ;;  %v345_v9 = vld [vmem:[%s468_s3 + $0x18] sm:$0xff]   ;;  %vm142_vm2 = vcmask 523264   ;;  %v372_v19 = vmov 0   ;;  %v192_v28 = vlaneseq }
   0xb   :  { %321 = vmatpush3.bf16.msra.mxu1 %v343_v6  ;;  %v288_v10 = vld [vmem:[%s467_s2] ss:$0 sm:$0xff]  ;;  %339 = vset.pattern.permute.xlu0 %v372_v19  ;;  %vm272_vm3 = vcmask 57344  }
   0xc   :  { %315 = vmatmul.mubr.msk.bf16.vlgmr.msra.gmra.mrb[0].mxu0 %vm66_vm1, %v47_v7  ;;  %322 = vmatprep.subr.bf16.mxu1 %v370_v2  ;;  %v45_v18 = vld [vmem:[#allocation2] sm:$0x1]  ;;  %v193_v29 = vshrl.u32 %v192_v28, 7 }
   0xd   :  { %332 = vmatprep.mubr.msk.f32.mxu0 %vm371_vm0, %v370_v2  ;;  %189 = vperm.xlu0 %339, %v45_v18   ;;  %v292_v20 = vld [vmem:[%s469_s4] ss:$0 sm:$0xff]  ;;  %s373_s4 = smov [#allocation3]  }
   0xe   :  { %v44_v27 = vld [vmem:[%s470_s5] sm:$0x1]  ;;  %v194_v30 = vsub.s32 0, %v193_v29  ;;  %s280_s18 = sshll.u32 %s373_s4, 4  ;;  %s281_s18 = int_to_ptr.vmem [resolvable:$true] %s280_s18 }
   0xf   :  { %323 = vmatpush3.bf16.msra.mxu1 %v344_v8  ;;  %s346_s19 = scalar_lea.vmem %s281_s18, 16  ;;  %s350_s20 = scalar_lea.vmem %s281_s18, 32 }
  0x10   :  { %324 = vmatprep.subr.bf16.mxu1 %v370_v2  ;;  %p347_p0 = scmp.ne.s32.totalorder %s281_s18, %s346_s19  ;;  %p351_p1 = scmp.lt.s32.totalorder %s281_s18, %s281_s18 }
  0x11   :  { %p352_p2 = scmp.lt.s32.totalorder %s350_s20, %s346_s19 }
  0x13   :  { %325 = vmatpush3.bf16.msra.mxu1 %v345_v9  ;;  %p353_p3 = por %p352_p2, %p351_p1 }
  0x15   :  { %p354_p4 = pnand %p353_p3, %p347_p0 }
  0x8c   :  { %v190_v31 = vpop.permute.xlu0 %189 }
  0x8d   :  { %v195_v32 = vrot.slane %v190_v31, %v194_v30 }
  0xdf   :  { %v104_v11 = vpop.f32.mrb[0].mxu0 }
  0xe0   :  { %v105_v12 = vadd.f32 %v288_v10, %v104_v11  ;;  %v316_v13 = vpop.f32.mrb[1].mxu0 }
  0xe1   :  { %v107_v14 = vpop.f32.mrb[2].mxu0 }
  0xe2   :  { %v110_v15 = vmax.f32 %v105_v12, 0.0  ;;  %v317_v16 = vpop.f32.mrb[3].mxu0 }
  0xe4   :  { %v111_v17 = vpack.c.bf16 %v110_v15, %v110_v15 }
  0xe6   :  { %327 = vmatmul.mubr.msk.bf16.vlgmr.msra.gmra.mrb[0].mxu1 %vm142_vm2, %v111_v17 }
 0x1b9   :  { %v180_v21 = vpop.f32.mrb[0].mxu1 }
 0x1ba   :  { %v181_v22 = vadd.f32 %v292_v20, %v180_v21  ;;  %v328_v23 = vpop.f32.mrb[1].mxu1 }
 0x1bb   :  { %v183_v24 = vpop.f32.mrb[2].mxu1 }
 0x1bc   :  { %v186_v25 = vmax.f32 %v181_v22, 0.0  ;;  %v329_v26 = vpop.f32.mrb[3].mxu1 }
 0x1be   :  { %331 = vmatpush3.xpose.msk.msra.mxu0 %vm66_vm1, %v186_v25 }
 0x1c1   :  { %333 = vmatmul.mubr.msk.f32.vlgmr.msra.gmra.mrb[4].mxu0 %vm66_vm1, %v44_v27 }
 0x294   :  { %v268_v33 = vpop.f32.mrb[4].mxu0 }
 0x295   :  { %v269_v34 = vadd.f32 %v268_v33, %v195_v32  ;;  %v334_v35 = vpop.f32.mrb[5].mxu0 }
 0x297   :  { %273 = vst.msk [vmem:[#allocation3] sm:$0x1] %vm272_vm3, %v269_v34 }
 0x298   :  { %357 = shalt.err (!%p354_p4)
}
 0x299   :  { %s358_s22 = scalar_lea.hbm %s472_s7, 16 }
 0x29a   :  { %p359_p5 = scmp.ne.s32.totalorder %s472_s7, %s358_s22  ;;  %p362_p6 = scmp.lt.u32.totalorder %s358_s22, %s472_s7 }
 0x29c   :  { %p364_p7 = pnand %p362_p6, %p359_p5 }
 0x29e   :  { %367 = shalt.err (!%p364_p7)
}
 0x29f   :  { %283 = dma.vmem_to_hbm [thread:$0]  %s281_s18, 16, %s472_s7, [#allocation4]  }
 0x2a0   :  { %368 = dma.done.wait [#allocation4], 16  }
 0x2a1   :  { %369 = vsyncadd [#allocation4], 4294967280 }
 0x2a2   :  { %287 = vsyncpa [#allocation4], 1 }

</bundles_post_ra>
